<compile_context>
chip_gen: v7x
topology: tpu7x:2x2x1
jax: 0.10.0
libtpu: 0.0.40
codegen_flags: <defaults>
</compile_context>

<pallas_src>
import jax
import jax.numpy as jnp
from jax import lax
from jax.experimental import pallas as pl
from jax.experimental.pallas import tpu as pltpu


def _attention_kernel(q_ref, a_ref, h_ref, m_sc, l_sc, acc_sc):
    # q_ref:   (TB, tLq, D)  -- plays the "key"/"value" role
    # a_ref:   (TB, tLa, D)  -- plays the "query" role
    # h_ref:   (TB, tLa, D)  -- output block (resident across the Lq axis)
    # m_sc/l_sc: (TB, tLa, 1) running max / running sum (f32)
    # acc_sc:  (TB, tLa, D)  f32 output accumulator
    lq = pl.program_id(2)

    @pl.when(lq == 0)
    def _init():
        m_sc[...] = jnp.full(m_sc.shape, -jnp.inf, dtype=m_sc.dtype)
        l_sc[...] = jnp.zeros(l_sc.shape, dtype=l_sc.dtype)
        acc_sc[...] = jnp.zeros(acc_sc.shape, dtype=acc_sc.dtype)

    # bf16 operands for the MXU, f32 accumulation. Softmax math stays in f32.
    a_bf = a_ref[...].astype(jnp.bfloat16)            # (TB, tLa, D)
    q_bf = q_ref[...].astype(jnp.bfloat16)            # (TB, tLq, D)

    # s[b, la, lq] = sum_d a[b, la, d] * q[b, lq, d]   (== (q @ a^T)^T)
    s = lax.dot_general(
        a_bf, q_bf, (((2,), (2,)), ((0,), (0,))),
        preferred_element_type=jnp.float32)            # (TB, tLa, tLq)

    m_prev = m_sc[...]
    m_new = jnp.maximum(m_prev, jnp.max(s, axis=-1, keepdims=True))
    alpha = jnp.exp(m_prev - m_new)                    # rescale of old stats
    p = jnp.exp(s - m_new)                             # (TB, tLa, tLq), f32

    l_sc[...] = alpha * l_sc[...] + jnp.sum(p, axis=-1, keepdims=True)

    # acc[b, la, d] += sum_lq p[b, la, lq] * q[b, lq, d]
    pv = lax.dot_general(
        p.astype(jnp.bfloat16), q_bf, (((2,), (1,)), ((0,), (0,))),
        preferred_element_type=jnp.float32)            # (TB, tLa, D)
    acc_sc[...] = alpha * acc_sc[...] + pv
    m_sc[...] = m_new

    @pl.when(lq == pl.num_programs(2) - 1)
    def _finalize():
        inv_l = pl.reciprocal(l_sc[...], approx=True)
        h_ref[...] = (acc_sc[...] * inv_l).astype(h_ref.dtype)


def _pick_tile(dim, target, align):
    """Largest `align`-multiple divisor of `dim` that is <= target (else dim)."""
    if dim <= target:
        return dim
    t = (target // align) * align
    while t >= align:
        if dim % t == 0:
            return t
        t -= align
    return dim


def attention_module(q, a, *, batch_tile=None, la_tile=256, lq_tile=512):
    """Pallas implementation of AttentionModule.forward(q, a) -> (B, La, D)."""
    B, Lq, D = q.shape
    Bb, La, Da = a.shape
    assert B == Bb and D == Da, "q and a must share batch and hidden dims"

    tb = batch_tile if batch_tile is not None else _pick_tile(B, 8, 1)
    tla = _pick_tile(La, la_tile, 8)
    tlq = _pick_tile(Lq, lq_tile, 8)
    grid = (B // tb, La // tla, Lq // tlq)

    # VMEM budget: double-buffered q/a/h blocks + scratch + score tiles.
    itemsize = jnp.dtype(q.dtype).itemsize
    blk_bytes = (tb * tlq * D + 2 * tb * tla * D) * itemsize
    scratch_bytes = tb * tla * (D + 2 * 128) * 4
    score_bytes = tb * tla * tlq * 4
    needed = 2 * blk_bytes + scratch_bytes + 3 * score_bytes
    vmem_limit = int(min(max(2 * needed, 32 * 1024 * 1024), 60 * 1024 * 1024))

    return pl.pallas_call(
        _attention_kernel,
        out_shape=jax.ShapeDtypeStruct((B, La, D), q.dtype),
        grid_spec=pltpu.PrefetchScalarGridSpec(
            num_scalar_prefetch=0,
            grid=grid,
            in_specs=[
                pl.BlockSpec((tb, tlq, D), lambda b, la, lq: (b, lq, 0)),
                pl.BlockSpec((tb, tla, D), lambda b, la, lq: (b, la, 0)),
            ],
            out_specs=pl.BlockSpec((tb, tla, D), lambda b, la, lq: (b, la, 0)),
            scratch_shapes=[
                pltpu.VMEM((tb, tla, 1), jnp.float32),   # running max
                pltpu.VMEM((tb, tla, 1), jnp.float32),   # running sum
                pltpu.VMEM((tb, tla, D), jnp.float32),   # output accumulator
            ],
        ),
        compiler_params=pltpu.CompilerParams(
            dimension_semantics=("parallel", "parallel", "arbitrary"),
            vmem_limit_bytes=vmem_limit,
        ),
    )(q, a)


def _reference_f32(q, a):
    """Exact module semantics in f32 (torch reference)."""
    s = jnp.einsum("bqd,bkd->bqk", q, a)
    e = jax.nn.softmax(s, axis=1)
    h = jnp.einsum("bqk,bqd->bkd", e, q)
    return h


def _reference_bf16_path(q, a):
    """Same algorithm as the kernel (bf16 MXU operands, f32 softmax/acc)."""
    qb = q.astype(jnp.bfloat16)
    ab = a.astype(jnp.bfloat16)
    s = jnp.einsum("bkd,bqd->bkq", ab, qb,
                   preferred_element_type=jnp.float32)      # (B, La, Lq)
    m = jnp.max(s, axis=-1, keepdims=True)
    p = jnp.exp(s - m)
    l = jnp.sum(p, axis=-1, keepdims=True)
    num = jnp.einsum("bkq,bqd->bkd", p.astype(jnp.bfloat16), qb,
                     preferred_element_type=jnp.float32)
    return num / l


if __name__ == "__main__":
    # Small shapes consistent with the module: B=2, Lq=8, La=16, D=32.
    key = jax.random.PRNGKey(0)
    kq, ka = jax.random.split(key)
    B, Lq, La, D = 2, 8, 16, 32
    q = jax.random.normal(kq, (B, Lq, D), dtype=jnp.float32)
    a = jax.random.normal(ka, (B, La, D), dtype=jnp.float32)

    h = attention_module(q, a)
    h = jax.block_until_ready(h)
    assert h.shape == (B, La, D)

    # Tight check: kernel matches the same bf16-operand algorithm in pure JAX.
    ref_bf16 = _reference_bf16_path(q, a)
    assert jnp.allclose(h, ref_bf16, atol=2e-2, rtol=2e-2), "mismatch vs bf16 path"

    # Looser check against the exact f32 torch semantics (bf16 MXU operands
    # plus approx reciprocal require a bf16-level tolerance).
    ref_f32 = _reference_f32(q, a)
    assert jnp.allclose(h, ref_f32, atol=1e-1, rtol=1e-1), "mismatch vs f32 reference"

    print("KERNEL_OK")
</pallas_src>

<mosaic_0001>
module attributes {stable_mosaic.version = 11 : i64} {
  func.func @_attention_kernel(%arg0: i32, %arg1: i32, %arg2: i32, %arg3: memref<2x8x32xf32, #tpu.memory_space<vmem>>, %arg4: memref<2x16x32xf32, #tpu.memory_space<vmem>>, %arg5: memref<2x16x32xf32, #tpu.memory_space<vmem>>, %arg6: memref<2x16x1xf32, #tpu.memory_space<vmem>>, %arg7: memref<2x16x1xf32, #tpu.memory_space<vmem>>, %arg8: memref<2x16x32xf32, #tpu.memory_space<vmem>>) attributes {dimension_semantics = [#tpu.dimension_semantics<parallel>, #tpu.dimension_semantics<parallel>, #tpu.dimension_semantics<arbitrary>], iteration_bounds = array<i64: 1, 1, 1>, scalar_prefetch = 0 : i64, scratch_operands = 3 : i64, tpu.core_type = #tpu.core_type<tc>, window_params = [{transform_indices = @transform_0, window_bounds = array<i64: 2, 8, 32>}, {transform_indices = @transform_1, window_bounds = array<i64: 2, 16, 32>}, {transform_indices = @transform_2, window_bounds = array<i64: 2, 16, 32>}]} {
    %c0_i32 = arith.constant 0 : i32
    %0 = arith.cmpi eq, %arg2, %c0_i32 : i32
    %1 = arith.extui %0 : i1 to i32
    %c0_i32_0 = arith.constant 0 : i32
    %2 = arith.cmpi ne, %1, %c0_i32_0 : i32
    scf.if %2 {
      %cst_29 = arith.constant 0xFF800000 : f32
      %34 = vector.broadcast %cst_29 : f32 to vector<2x16x1xf32>
      %c0_30 = arith.constant 0 : index
      %c0_31 = arith.constant 0 : index
      %c0_32 = arith.constant 0 : index
      %35 = vector.load %arg6[%c0_30, %c0_31, %c0_32] : memref<2x16x1xf32, #tpu.memory_space<vmem>>, vector<2x16x1xf32>
      tpu.vector_store %arg6[%c0_30, %c0_31, %c0_32], %34 {strides = array<i32>} : memref<2x16x1xf32, #tpu.memory_space<vmem>>, vector<2x16x1xf32>,
      %cst_33 = arith.constant 0.000000e+00 : f32
      %36 = vector.broadcast %cst_33 : f32 to vector<2x16x1xf32>
      %c0_34 = arith.constant 0 : index
      %c0_35 = arith.constant 0 : index
      %c0_36 = arith.constant 0 : index
      %37 = vector.load %arg7[%c0_34, %c0_35, %c0_36] : memref<2x16x1xf32, #tpu.memory_space<vmem>>, vector<2x16x1xf32>
      tpu.vector_store %arg7[%c0_34, %c0_35, %c0_36], %36 {strides = array<i32>} : memref<2x16x1xf32, #tpu.memory_space<vmem>>, vector<2x16x1xf32>,
      %cst_37 = arith.constant 0.000000e+00 : f32
      %38 = vector.broadcast %cst_37 : f32 to vector<2x16x32xf32>
      %c0_38 = arith.constant 0 : index
      %c0_39 = arith.constant 0 : index
      %c0_40 = arith.constant 0 : index
      %39 = vector.load %arg8[%c0_38, %c0_39, %c0_40] : memref<2x16x32xf32, #tpu.memory_space<vmem>>, vector<2x16x32xf32>
      tpu.vector_store %arg8[%c0_38, %c0_39, %c0_40], %38 {strides = array<i32>} : memref<2x16x32xf32, #tpu.memory_space<vmem>>, vector<2x16x32xf32>,
    } else {
    }
    %c0 = arith.constant 0 : index
    %c0_1 = arith.constant 0 : index
    %c0_2 = arith.constant 0 : index
    %3 = vector.load %arg4[%c0, %c0_1, %c0_2] : memref<2x16x32xf32, #tpu.memory_space<vmem>>, vector<2x16x32xf32>
    %4 = arith.truncf %3 : vector<2x16x32xf32> to vector<2x16x32xbf16>
    %c0_3 = arith.constant 0 : index
    %c0_4 = arith.constant 0 : index
    %c0_5 = arith.constant 0 : index
    %5 = vector.load %arg3[%c0_3, %c0_4, %c0_5] : memref<2x8x32xf32, #tpu.memory_space<vmem>>, vector<2x8x32xf32>
    %6 = arith.truncf %5 : vector<2x8x32xf32> to vector<2x8x32xbf16>
    %cst = arith.constant dense<0.000000e+00> : vector<2x16x8xf32>
    %7 = tpu.matmul %4, %6, %cst {dimension_numbers = #tpu.dot_dimension_numbers<[2], [2], [1], [1], [0, 0, 0, 1, 1, 1], [0], [0]>} : vector<2x16x32xbf16>, vector<2x8x32xbf16>, vector<2x16x8xf32> -> vector<2x16x8xf32>
    %c0_6 = arith.constant 0 : index
    %c0_7 = arith.constant 0 : index
    %c0_8 = arith.constant 0 : index
    %8 = vector.load %arg6[%c0_6, %c0_7, %c0_8] : memref<2x16x1xf32, #tpu.memory_space<vmem>>, vector<2x16x1xf32>
    %cst_9 = arith.constant dense<0xFF800000> : vector<2x16xf32>
    %9 = vector.multi_reduction <maximumf>, %7, %cst_9 [2] : vector<2x16x8xf32> to vector<2x16xf32>
    %10 = vector.shape_cast %9 : vector<2x16xf32> to vector<2x16x1xf32>
    %11 = arith.maximumf %8, %10 : vector<2x16x1xf32>
    %12 = arith.subf %8, %11 : vector<2x16x1xf32>
    %13 = math.exp %12 : vector<2x16x1xf32>
    %14 = vector.broadcast %11 : vector<2x16x1xf32> to vector<2x16x8xf32>
    %15 = arith.subf %7, %14 : vector<2x16x8xf32>
    %16 = math.exp %15 : vector<2x16x8xf32>
    %c0_10 = arith.constant 0 : index
    %c0_11 = arith.constant 0 : index
    %c0_12 = arith.constant 0 : index
    %17 = vector.load %arg7[%c0_10, %c0_11, %c0_12] : memref<2x16x1xf32, #tpu.memory_space<vmem>>, vector<2x16x1xf32>
    %18 = arith.mulf %13, %17 : vector<2x16x1xf32>
    %cst_13 = arith.constant dense<0.000000e+00> : vector<2x16xf32>
    %19 = vector.multi_reduction <add>, %16, %cst_13 [2] : vector<2x16x8xf32> to vector<2x16xf32>
    %20 = vector.shape_cast %19 : vector<2x16xf32> to vector<2x16x1xf32>
    %21 = arith.addf %18, %20 : vector<2x16x1xf32>
    %c0_14 = arith.constant 0 : index
    %c0_15 = arith.constant 0 : index
    %c0_16 = arith.constant 0 : index
    %22 = vector.load %arg7[%c0_14, %c0_15, %c0_16] : memref<2x16x1xf32, #tpu.memory_space<vmem>>, vector<2x16x1xf32>
    tpu.vector_store %arg7[%c0_14, %c0_15, %c0_16], %21 {strides = array<i32>} : memref<2x16x1xf32, #tpu.memory_space<vmem>>, vector<2x16x1xf32>,
    %23 = arith.truncf %16 : vector<2x16x8xf32> to vector<2x16x8xbf16>
    %cst_17 = arith.constant dense<0.000000e+00> : vector<2x16x32xf32>
    %24 = tpu.matmul %23, %6, %cst_17 {dimension_numbers = #tpu.dot_dimension_numbers<[2], [1], [1], [2], [0, 0, 0, 1, 1, 2], [0], [0]>} : vector<2x16x8xbf16>, vector<2x8x32xbf16>, vector<2x16x32xf32> -> vector<2x16x32xf32>
    %c0_18 = arith.constant 0 : index
    %c0_19 = arith.constant 0 : index
    %c0_20 = arith.constant 0 : index
    %25 = vector.load %arg8[%c0_18, %c0_19, %c0_20] : memref<2x16x32xf32, #tpu.memory_space<vmem>>, vector<2x16x32xf32>
    %26 = vector.broadcast %13 : vector<2x16x1xf32> to vector<2x16x32xf32>
    %27 = arith.mulf %26, %25 : vector<2x16x32xf32>
    %28 = arith.addf %27, %24 : vector<2x16x32xf32>
    %c0_21 = arith.constant 0 : index
    %c0_22 = arith.constant 0 : index
    %c0_23 = arith.constant 0 : index
    %29 = vector.load %arg8[%c0_21, %c0_22, %c0_23] : memref<2x16x32xf32, #tpu.memory_space<vmem>>, vector<2x16x32xf32>
    tpu.vector_store %arg8[%c0_21, %c0_22, %c0_23], %28 {strides = array<i32>} : memref<2x16x32xf32, #tpu.memory_space<vmem>>, vector<2x16x32xf32>,
    %c0_24 = arith.constant 0 : index
    %c0_25 = arith.constant 0 : index
    %c0_26 = arith.constant 0 : index
    %30 = vector.load %arg6[%c0_24, %c0_25, %c0_26] : memref<2x16x1xf32, #tpu.memory_space<vmem>>, vector<2x16x1xf32>
    tpu.vector_store %arg6[%c0_24, %c0_25, %c0_26], %11 {strides = array<i32>} : memref<2x16x1xf32, #tpu.memory_space<vmem>>, vector<2x16x1xf32>,
    %c0_i32_27 = arith.constant 0 : i32
    %31 = arith.cmpi eq, %arg2, %c0_i32_27 : i32
    %32 = arith.extui %31 : i1 to i32
    %c0_i32_28 = arith.constant 0 : i32
    %33 = arith.cmpi ne, %32, %c0_i32_28 : i32
    scf.if %33 {
      %c0_29 = arith.constant 0 : index
      %c0_30 = arith.constant 0 : index
      %c0_31 = arith.constant 0 : index
      %34 = vector.load %arg7[%c0_29, %c0_30, %c0_31] : memref<2x16x1xf32, #tpu.memory_space<vmem>>, vector<2x16x1xf32>
      %35 = tpu.reciprocal %34 {approx = true} : vector<2x16x1xf32> -> vector<2x16x1xf32>
      %c0_32 = arith.constant 0 : index
      %c0_33 = arith.constant 0 : index
      %c0_34 = arith.constant 0 : index
      %36 = vector.load %arg8[%c0_32, %c0_33, %c0_34] : memref<2x16x32xf32, #tpu.memory_space<vmem>>, vector<2x16x32xf32>
      %37 = vector.broadcast %35 : vector<2x16x1xf32> to vector<2x16x32xf32>
      %38 = arith.mulf %36, %37 : vector<2x16x32xf32>
      %c0_35 = arith.constant 0 : index
      %c0_36 = arith.constant 0 : index
      %c0_37 = arith.constant 0 : index
      %39 = vector.load %arg5[%c0_35, %c0_36, %c0_37] : memref<2x16x32xf32, #tpu.memory_space<vmem>>, vector<2x16x32xf32>
      tpu.vector_store %arg5[%c0_35, %c0_36, %c0_37], %38 {strides = array<i32>} : memref<2x16x32xf32, #tpu.memory_space<vmem>>, vector<2x16x32xf32>,
    } else {
    }
    return
  }
  func.func @transform_0(%arg0: i32, %arg1: i32, %arg2: i32) -> (i32, i32, i32) {
    %c0_i32 = arith.constant 0 : i32
    %c0_i32_0 = arith.constant 0 : i32
    return %arg0, %arg2, %c0_i32 : i32, i32, i32
  }
  func.func @transform_1(%arg0: i32, %arg1: i32, %arg2: i32) -> (i32, i32, i32) {
    %c0_i32 = arith.constant 0 : i32
    %c0_i32_0 = arith.constant 0 : i32
    return %arg0, %arg1, %c0_i32 : i32, i32, i32
  }
  func.func @transform_2(%arg0: i32, %arg1: i32, %arg2: i32) -> (i32, i32, i32) {
    %c0_i32 = arith.constant 0 : i32
    %c0_i32_0 = arith.constant 0 : i32
    return %arg0, %arg1, %c0_i32 : i32, i32, i32
  }
}

</mosaic_0001>

<bundles_post_ra>
// kernel: tpu_custom_call.1
= control target key start
LH: loop header
LB: loop body
LE: loop exit
PB: predicated region body
PF: predicated region fallthrough
CT: control target
= control target key end

     0   :  { %7 = vsyncpa [#allocation6], 0  ;;  %s724_s0 = inlined_call_operand.hbm [shape: f32[2,8,32], index: 0, kind: input, shape index: {}]   ;;  %s725_s1 = inlined_call_operand.hbm [shape: f32[2,16,32], index: 1, kind: input, shape index: {}]   ;;  %s726_s2 = inlined_call_operand.hbm [shape: f32[2,16,32], index: 2, kind: output, shape index: {}]  }
   0x1   :  { %8 = vsyncpa [#allocation9], 0 }
   0x2   :  { %9 = vsyncpa [#allocation7], 0  ;;  %s597_s9 = smov [#allocation5]   ;;  %s525_s13 = scalar_lea.hbm %s724_s0, 256 }
   0x3   :  { %s15_s10 = sshll.u32 %s597_s9, 4  ;;  %p526_p0 = scmp.ne.s32.totalorder %s724_s0, %s525_s13  ;;  %s16_s10 = int_to_ptr.vmem [resolvable:$true] %s15_s10 }
   0x4   :  { %p529_p1 = scmp.lt.u32.totalorder %s525_s13, %s724_s0 }
   0x6   :  { %p531_p2 = pnand %p529_p1, %p526_p0 }
   0x8   :  { %534 = shalt.err (!%p531_p2)
}
   0x9   :  { %s535_s18 = scalar_lea.vmem %s16_s10, 256  ;;  %p540_p4 = scmp.lt.s32.totalorder %s16_s10, %s16_s10 }
   0xa   :  { %p536_p3 = scmp.ne.s32.totalorder %s16_s10, %s535_s18  ;;  %p541_p5 = scmp.lt.s32.totalorder %s535_s18, %s535_s18 }
   0xc   :  { %p542_p6 = por %p541_p5, %p540_p4 }
   0xe   :  { %p543_p7 = pnand %p542_p6, %p536_p3 }
  0x10   :  { %546 = shalt.err (!%p543_p7)
}
  0x11   :  { %s598_s19 = smov 128   ;;  %s599_s20 = smov 8  }
  0x12   :  { %21 = dma.hbm_to_vmem [thread:$0]  %s724_s0, 256, %s16_s10, [#allocation6], %s598_s19, %s598_s19, %s599_s20  }
  0x13   :  { %s600_s23 = smov [#allocation8]   ;;  %s547_s27 = scalar_lea.hbm %s725_s1, 512 }
  0x14   :  { %s27_s24 = sshll.u32 %s600_s23, 4  ;;  %p548_p8 = scmp.ne.s32.totalorder %s725_s1, %s547_s27  ;;  %s28_s24 = int_to_ptr.vmem [resolvable:$true] %s27_s24 }
  0x15   :  { %p551_p9 = scmp.lt.u32.totalorder %s547_s27, %s725_s1 }
  0x17   :  { %p553_p10 = pnand %p551_p9, %p548_p8 }
  0x19   :  { %556 = shalt.err (!%p553_p10)
}
  0x1a   :  { %s557_s4 = scalar_lea.vmem %s28_s24, 512  ;;  %p562_p12 = scmp.lt.s32.totalorder %s28_s24, %s28_s24 }
  0x1b   :  { %p558_p11 = scmp.ne.s32.totalorder %s28_s24, %s557_s4  ;;  %p563_p13 = scmp.lt.s32.totalorder %s557_s4, %s557_s4 }
  0x1d   :  { %p564_p0 = por %p563_p13, %p562_p12 }
  0x1f   :  { %p565_p1 = pnand %p564_p0, %p558_p11 }
  0x21   :  { %568 = shalt.err (!%p565_p1)
}
  0x22   :  { %33 = dma.hbm_to_vmem [thread:$0]  %s725_s1, 512, %s28_s24, [#allocation9], %s598_s19, %s598_s19, %s599_s20  }
  0x23   :  { %591 = dma.done.wait [#allocation6], 256  }
  0x24   :  { %592 = vsyncadd [#allocation6], 4294967040 }
  0x25   :  { %593 = dma.done.wait [#allocation9], 512  }
  0x26   :  { %594 = vsyncadd [#allocation9], 4294966784  ;;  %vm54_vm0 = vcmask 261120   ;;  %v601_v0 = vmov 0.0   ;;  %vm602_vm1 = vmmov 0   ;;  %v65_v1 = vld [vmem:[#allocation5] sm:$0xff] }
  0x27   :  { %466 = vmatprep.subr.bf16.mxu0 %v601_v0  ;;  %472 = vmatprep.subr.bf16.mxu1 %v601_v0  ;;  %55 = vst.msk [vmem:[#allocation4] sm:$0xff] %vm54_vm0, %v601_v0  ;;  %56 = vst.msk [vmem:[#allocation4 + $0x8] sm:$0xff] %vm54_vm0, %v601_v0  ;;  %v66_v2 = vld [vmem:[#allocation5 + $0x8] sm:$0xff]  ;;  %v657_v3 = vpack.c.bf16 %v65_v1, %v65_v1  ;;  %v59_v7 = vld [vmem:[#allocation8] sm:$0xff]  ;;  %vm45_vm2 = vcmask 7168   ;;  %v603_v13 = vmov -inf  }
  0x28   :  { %57 = vst.msk [vmem:[#allocation4 + $0x10] sm:$0xff] %vm54_vm0, %v601_v0  ;;  %58 = vst.msk [vmem:[#allocation4 + $0x18] sm:$0xff] %vm54_vm0, %v601_v0  ;;  %468 = vmatprep.mubr.msk.bf16.mxu0 %vm602_vm1, %v601_v0  ;;  %474 = vmatprep.mubr.msk.bf16.mxu1 %vm602_vm1, %v601_v0  ;;  %v659_v4 = vpack.c.bf16 %v66_v2, %v66_v2  ;;  %v60_v8 = vld [vmem:[#allocation8 + $0x8] sm:$0xff]  ;;  %v61_v9 = vld [vmem:[#allocation8 + $0x10] sm:$0xff]  ;;  %vm168_vm3 = vcmask 64512   ;;  %v604_v26 = vmov 0  }
  0x29   :  { %v74_v5 = vsel %vm54_vm0, %v657_v3, 0  ;;  %v62_v10 = vld [vmem:[#allocation8 + $0x18] sm:$0xff]  ;;  %v63_v11 = vpack.c.bf16 %v60_v8, %v59_v7  ;;  %48 = vst.msk [vmem:[#allocation2 + $0x10] sm:$0xff] %vm45_vm2, %v603_v13  ;;  %46 = vst.msk [vmem:[#allocation2] sm:$0xff] %vm45_vm2, %v603_v13  ;;  %500 = vset.pattern.permute.xlu1 %v604_v26  ;;  %499 = vset.pattern.permute.xlu0 %v604_v26  ;;  %vm263_vm4 = vcmask 1043456   ;;  %s605_s1 = smov [#allocation10]  }
  0x2a   :  { %v121_v6 = vsel %vm54_vm0, %v659_v4, 0  ;;  %467 = vmatpush3.bf16.xpose.msra.mxu0 %v74_v5  ;;  %v64_v12 = vpack.c.bf16 %v62_v10, %v61_v9  ;;  %47 = vst.msk [vmem:[#allocation2 + $0x8] sm:$0xff] %vm45_vm2, %v603_v13  ;;  %49 = vst.msk [vmem:[#allocation2 + $0x18] sm:$0xff] %vm45_vm2, %v603_v13  ;;  %v264_v43 = vsel %vm263_vm4, %v657_v3, 0  ;;  %v310_v44 = vsel %vm263_vm4, %v659_v4, 0  ;;  %s441_s6 = sshll.u32 %s605_s1, 4  ;;  %s442_s6 = int_to_ptr.vmem [resolvable:$true] %s441_s6 }
  0x2b   :  { %473 = vmatpush3.bf16.xpose.msra.mxu1 %v121_v6  ;;  %478 = vmatprep.subr.bf16.mxu0 %v601_v0  ;;  %50 = vst.msk [vmem:[#allocation3] sm:$0xff] %vm45_vm2, %v601_v0  ;;  %51 = vst.msk [vmem:[#allocation3 + $0x8] sm:$0xff] %vm45_vm2, %v601_v0  ;;  %s569_s7 = scalar_lea.vmem %s442_s6, 512  ;;  %p574_p3 = scmp.lt.s32.totalorder %s442_s6, %s442_s6 }
  0x2c   :  { %484 = vmatprep.subr.bf16.mxu1 %v601_v0  ;;  %52 = vst.msk [vmem:[#allocation3 + $0x10] sm:$0xff] %vm45_vm2, %v601_v0  ;;  %53 = vst.msk [vmem:[#allocation3 + $0x18] sm:$0xff] %vm45_vm2, %v601_v0  ;;  %p570_p2 = scmp.ne.s32.totalorder %s442_s6, %s569_s7  ;;  %p575_p4 = scmp.lt.s32.totalorder %s569_s7, %s569_s7 }
  0x2e   :  { %p576_p5 = por %p575_p4, %p574_p3 }
  0x30   :  { %v681_v27 = vld [vmem:[#allocation2 + $0x10] sm:$0xff]  ;;  %v164_v28 = vld [vmem:[#allocation2] sm:$0xff]  ;;  %p577_p6 = pnand %p576_p5, %p570_p2 }
  0x31   :  { %469 = vmatmul.mubr.msk.bf16.vlgmr.msra.gmra.mrb[0].mxu0 %vm54_vm0, %v63_v11  ;;  %v167_v33 = vld [vmem:[#allocation2 + $0x18] sm:$0xff]  ;;  %v165_v34 = vld [vmem:[#allocation2 + $0x8] sm:$0xff] }
  0x32   :  { %475 = vmatmul.mubr.msk.bf16.vlgmr.msra.gmra.mrb[0].mxu1 %vm54_vm0, %v64_v12  ;;  %480 = vmatprep.mubr.msk.bf16.mxu0 %vm602_vm1, %v601_v0  ;;  %v229_v11 = vld [vmem:[#allocation3] sm:$0xff]  ;;  %v230_v13 = vld [vmem:[#allocation3 + $0x8] sm:$0xff] }
  0x33   :  { %486 = vmatprep.mubr.msk.bf16.mxu1 %vm602_vm1, %v601_v0  ;;  %479 = vmatpush3.bf16.msra.mxu0 %v264_v43 }
  0x34   :  { %485 = vmatpush3.bf16.msra.mxu1 %v310_v44 }
 0x104   :  { %v110_v14 = vpop.f32.mrb[0].mxu0 }
 0x105   :  { %v157_v15 = vpop.f32.mrb[0].mxu1  ;;  %v470_v16 = vpop.f32.mrb[1].mxu0  ;;  %v169_v19 = vsel %vm168_vm3, %v110_v14, -inf }
 0x106   :  { %v476_v17 = vpop.f32.mrb[1].mxu1  ;;  %v175_v18 = vsel %vm168_vm3, %v157_v15, -inf  ;;  %170 = vmax.xlane.f32.xlu0 %v169_v19  ;;  %v113_v21 = vpop.f32.mrb[2].mxu0 }
 0x107   :  { %176 = vmax.xlane.f32.xlu1 %v175_v18  ;;  %v160_v20 = vpop.f32.mrb[2].mxu1  ;;  %v471_v22 = vpop.f32.mrb[3].mxu0  ;;  %v172_v25 = vsel %vm168_vm3, %v113_v21, -inf }
 0x108   :  { %v477_v23 = vpop.f32.mrb[3].mxu1  ;;  %v178_v24 = vsel %vm168_vm3, %v160_v20, -inf  ;;  %v232_v22 = vld [vmem:[#allocation3 + $0x18] sm:$0xff] }
 0x10a   :  { %173 = vmax.xlane.f32.xlu0 %v172_v25 }
 0x10b   :  { %179 = vmax.xlane.f32.xlu1 %v178_v24 }
 0x193   :  { %v171_v30 = vpop.xlane.xlu0 %170 }
 0x194   :  { %v177_v29 = vpop.xlane.xlu1 %176  ;;  %v181_v32 = vmax.f32 %v164_v28, %v171_v30 }
 0x195   :  { %v183_v31 = vmax.f32 %v681_v27, %v177_v29 }
 0x196   :  { %v185_v36 = vsub.f32 %v164_v28, %v181_v32  ;;  %389 = vst.msk [vmem:[#allocation2] sm:$0xff] %vm45_vm2, %v181_v32  ;;  %199 = vperm.xlu0 %499, %v181_v32  }
 0x197   :  { %v187_v35 = vsub.f32 %v681_v27, %v183_v31  ;;  %391 = vst.msk [vmem:[#allocation2 + $0x10] sm:$0xff] %vm45_vm2, %v183_v31  ;;  %209 = vperm.xlu1 %500, %v183_v31   ;;  %v174_v38 = vpop.xlane.xlu0 %173 }
 0x198   :  { %v180_v37 = vpop.xlane.xlu1 %179  ;;  %v182_v40 = vmax.f32 %v165_v34, %v174_v38  ;;  %v189_v3 = vmul.f32 1.442695, %v185_v36  ;;  %v353_v36 = vld [vmem:[#allocation4] sm:$0xff]  ;;  %v354_v38 = vld [vmem:[#allocation4 + $0x8] sm:$0xff] }
 0x199   :  { %v184_v39 = vmax.f32 %v167_v33, %v180_v37  ;;  %v193_v5 = vmul.f32 1.442695, %v187_v35 }
 0x19a   :  { %v186_v42 = vsub.f32 %v165_v34, %v182_v40  ;;  %390 = vst.msk [vmem:[#allocation2 + $0x8] sm:$0xff] %vm45_vm2, %v182_v40 }
 0x19b   :  { %v188_v41 = vsub.f32 %v167_v33, %v184_v39  ;;  %392 = vst.msk [vmem:[#allocation2 + $0x18] sm:$0xff] %vm45_vm2, %v184_v39  ;;  %204 = vperm.xlu1 %500, %v182_v40  }
 0x19c   :  { %v191_v4 = vmul.f32 1.442695, %v186_v42 }
 0x19d   :  { %v195_v6 = vmul.f32 1.442695, %v188_v41  ;;  %v355_v41 = vld [vmem:[#allocation4 + $0x10] sm:$0xff] }
 0x19f   :  { %214 = vperm.xlu1 %500, %v184_v39  }
 0x215   :  { %v200_v46 = vpop.permute.xlu0 %199 }
 0x216   :  { %v210_v45 = vpop.permute.xlu1 %209  ;;  %v217_v48 = vsub.f32 %v110_v14, %v200_v46  ;;  %v356_v46 = vld [vmem:[#allocation4 + $0x18] sm:$0xff] }
 0x217   :  { %v219_v47 = vsub.f32 %v157_v15, %v210_v45  ;;  %v231_v15 = vld [vmem:[#allocation3 + $0x10] sm:$0xff] }
 0x218   :  { %v221_v49 = vmul.f32 1.442695, %v217_v48 }
 0x219   :  { %v225_v50 = vmul.f32 1.442695, %v219_v47 }
 0x21a   :  { %v205_v51 = vpop.permute.xlu1 %204  ;;  %501 = vpow2.f32 %v221_v49 }
 0x21b   :  { %v218_v52 = vsub.f32 %v113_v21, %v205_v51  ;;  %503 = vpow2.f32 %v225_v50 }
 0x21d   :  { %v223_v53 = vmul.f32 1.442695, %v218_v52 }
 0x21e   :  { %v215_v54 = vpop.permute.xlu1 %214 }
 0x21f   :  { %505 = vpow2.f32 %v223_v53  ;;  %v220_v55 = vsub.f32 %v160_v20, %v215_v54 }
 0x221   :  { %v227_v56 = vmul.f32 1.442695, %v220_v55 }
 0x223   :  { %507 = vpow2.f32 %v227_v56 }
 0x224   :  { %v502_v57 = vpop.eup %501  ;;  %509 = vpow2.f32 %v189_v3 }
 0x225   :  { %v237_v58 = vsel %vm168_vm3, %v502_v57, 0.0  ;;  %v504_v59 = vpop.eup %503  ;;  %511 = vpow2.f32 %v191_v4 }
 0x226   :  { %238 = vadd.xlane.f32.xlu1 %v237_v58  ;;  %v243_v63 = vsel %vm168_vm3, %v504_v59, 0.0  ;;  %513 = vpow2.f32 %v193_v5 }
 0x227   :  { %515 = vpow2.f32 %v195_v6 }
 0x229   :  { %v506_v60 = vpop.eup %505 }
 0x22a   :  { %v240_v61 = vsel %vm168_vm3, %v506_v60, 0.0  ;;  %v258_v62 = vpack.c.bf16 %v506_v60, %v502_v57  ;;  %244 = vadd.xlane.f32.xlu1 %v243_v63 }
 0x22b   :  { %241 = vadd.xlane.f32.xlu0 %v240_v61 }
 0x22c   :  { %481 = vmatmul.mubr.msk.bf16.vlgmr.msra.gmra.mrb[4].mxu0 %vm168_vm3, %v258_v62 }
 0x22d   :  { %v508_v0 = vpop.eup %507 }
 0x22e   :  { %v246_v1 = vsel %vm168_vm3, %v508_v0, 0.0  ;;  %v259_v2 = vpack.c.bf16 %v508_v0, %v504_v59  ;;  %v510_v7 = vpop.eup %509 }
 0x22f   :  { %247 = vadd.xlane.f32.xlu1 %v246_v1  ;;  %v512_v8 = vpop.eup %511  ;;  %v233_v12 = vmul.f32 %v510_v7, %v229_v11 }
 0x230   :  { %487 = vmatmul.mubr.msk.bf16.vlgmr.msra.gmra.mrb[4].mxu1 %vm168_vm3, %v259_v2  ;;  %v514_v9 = vpop.eup %513  ;;  %v234_v17 = vmul.f32 %v512_v8, %v230_v13 }
 0x231   :  { %v516_v10 = vpop.eup %515  ;;  %v235_v18 = vmul.f32 %v514_v9, %v231_v15 }
 0x232   :  { %v236_v24 = vmul.f32 %v516_v10, %v232_v22 }
 0x240   :  { %359 = vperm.xlu1 %500, %v510_v7  }
 0x241   :  { %364 = vperm.xlu0 %499, %v512_v8  }
 0x244   :  { %369 = vperm.xlu1 %500, %v514_v9  }
 0x248   :  { %374 = vperm.xlu1 %500, %v516_v10  }
 0x2b3   :  { %v239_v14 = vpop.xlane.xlu1 %238 }
 0x2b4   :  { %v249_v16 = vadd.f32 %v239_v14, %v233_v12 }
 0x2b6   :  { %254 = vst.msk [vmem:[#allocation3] sm:$0xff] %vm45_vm2, %v249_v16 }
 0x2b7   :  { %v245_v20 = vpop.xlane.xlu1 %244 }
 0x2b8   :  { %v242_v19 = vpop.xlane.xlu0 %241  ;;  %v251_v23 = vadd.f32 %v245_v20, %v235_v18 }
 0x2b9   :  { %v250_v21 = vadd.f32 %v242_v19, %v234_v17 }
 0x2ba   :  { %256 = vst.msk [vmem:[#allocation3 + $0x10] sm:$0xff] %vm45_vm2, %v251_v23 }
 0x2bb   :  { %255 = vst.msk [vmem:[#allocation3 + $0x8] sm:$0xff] %vm45_vm2, %v250_v21 }
 0x2bc   :  { %v248_v25 = vpop.xlane.xlu1 %247 }
 0x2bd   :  { %v252_v26 = vadd.f32 %v248_v25, %v236_v24  ;;  %v396_v27 = vld [vmem:[#allocation3] sm:$0xff] }
 0x2be   :  { %517 = vrcp.f32 %v396_v27 }
 0x2bf   :  { %257 = vst.msk [vmem:[#allocation3 + $0x18] sm:$0xff] %vm45_vm2, %v252_v26 }
 0x2c0   :  { %v360_v35 = vpop.permute.xlu1 %359  ;;  %v365_v39 = vpop.permute.xlu0 %364 }
 0x2c1   :  { %v398_v29 = vld [vmem:[#allocation3 + $0x10] sm:$0xff]  ;;  %v377_v40 = vmul.f32 %v360_v35, %v353_v36  ;;  %v378_v43 = vmul.f32 %v365_v39, %v354_v38 }
 0x2c2   :  { %v397_v28 = vld [vmem:[#allocation3 + $0x8] sm:$0xff] }
 0x2c3   :  { %519 = vrcp.f32 %v397_v28 }
 0x2c4   :  { %521 = vrcp.f32 %v398_v29  ;;  %v370_v37 = vpop.permute.xlu1 %369 }
 0x2c5   :  { %v379_v49 = vmul.f32 %v370_v37, %v355_v41 }
 0x2c6   :  { %v399_v30 = vld [vmem:[#allocation3 + $0x18] sm:$0xff] }
 0x2c7   :  { %523 = vrcp.f32 %v399_v30 }
 0x2c8   :  { %v518_v31 = vpop.eup %517  ;;  %v375_v47 = vpop.permute.xlu1 %374 }
 0x2c9   :  { %410 = vperm.xlu1 %500, %v518_v31   ;;  %v380_v53 = vmul.f32 %v375_v47, %v356_v46 }
 0x2cd   :  { %v520_v32 = vpop.eup %519 }
 0x2ce   :  { %v522_v33 = vpop.eup %521  ;;  %415 = vperm.xlu0 %499, %v520_v32  }
 0x2cf   :  { %420 = vperm.xlu1 %500, %v522_v33  }
 0x2d1   :  { %v524_v34 = vpop.eup %523 }
 0x2d2   :  { %425 = vperm.xlu0 %499, %v524_v34  }
 0x2ff   :  { %v300_v42 = vpop.f32.mrb[4].mxu0 }
 0x300   :  { %v381_v44 = vadd.f32 %v377_v40, %v300_v42  ;;  %v482_v45 = vpop.f32.mrb[5].mxu0 }
 0x301   :  { %v303_v48 = vpop.f32.mrb[6].mxu0 }
 0x302   :  { %385 = vst.msk [vmem:[#allocation4] sm:$0xff] %vm54_vm0, %v381_v44  ;;  %v382_v50 = vadd.f32 %v378_v43, %v303_v48  ;;  %v483_v51 = vpop.f32.mrb[7].mxu0 }
 0x303   :  { %v346_v52 = vpop.f32.mrb[4].mxu1 }
 0x304   :  { %386 = vst.msk [vmem:[#allocation4 + $0x8] sm:$0xff] %vm54_vm0, %v382_v50  ;;  %v383_v54 = vadd.f32 %v379_v49, %v346_v52  ;;  %v488_v55 = vpop.f32.mrb[5].mxu1 }
 0x305   :  { %v349_v56 = vpop.f32.mrb[6].mxu1 }
 0x306   :  { %387 = vst.msk [vmem:[#allocation4 + $0x10] sm:$0xff] %vm54_vm0, %v383_v54  ;;  %v384_v57 = vadd.f32 %v380_v53, %v349_v56  ;;  %v489_v58 = vpop.f32.mrb[7].mxu1 }
 0x308   :  { %388 = vst.msk [vmem:[#allocation4 + $0x18] sm:$0xff] %vm54_vm0, %v384_v57 }
 0x309   :  { %v404_v59 = vld [vmem:[#allocation4] sm:$0xff] }
 0x30b   :  { %v405_v62 = vld [vmem:[#allocation4 + $0x8] sm:$0xff] }
 0x30d   :  { %v406_v1 = vld [vmem:[#allocation4 + $0x10] sm:$0xff] }
 0x30f   :  { %v407_v5 = vld [vmem:[#allocation4 + $0x18] sm:$0xff] }
 0x348   :  { %v411_v60 = vpop.permute.xlu1 %410 }
 0x349   :  { %v428_v61 = vmul.f32 %v411_v60, %v404_v59 }
 0x34b   :  { %432 = vst.msk [vmem:[#allocation10] sm:$0xff] %vm54_vm0, %v428_v61 }
 0x34d   :  { %v416_v63 = vpop.permute.xlu0 %415 }
 0x34e   :  { %v429_v0 = vmul.f32 %v416_v63, %v405_v62  ;;  %v421_v2 = vpop.permute.xlu1 %420 }
 0x34f   :  { %v430_v3 = vmul.f32 %v421_v2, %v406_v1 }
 0x350   :  { %433 = vst.msk [vmem:[#allocation10 + $0x8] sm:$0xff] %vm54_vm0, %v429_v0 }
 0x351   :  { %434 = vst.msk [vmem:[#allocation10 + $0x10] sm:$0xff] %vm54_vm0, %v430_v3  ;;  %v426_v4 = vpop.permute.xlu0 %425 }
 0x352   :  { %v431_v6 = vmul.f32 %v426_v4, %v407_v5 }
 0x354   :  { %435 = vst.msk [vmem:[#allocation10 + $0x18] sm:$0xff] %vm54_vm0, %v431_v6 }
 0x355   :  { %580 = shalt.err (!%p577_p6)
}
 0x356   :  { %s581_s10 = scalar_lea.hbm %s726_s2, 512 }
 0x357   :  { %p582_p7 = scmp.ne.s32.totalorder %s726_s2, %s581_s10  ;;  %p585_p8 = scmp.lt.u32.totalorder %s581_s10, %s726_s2 }
 0x359   :  { %p587_p9 = pnand %p585_p8, %p582_p7 }
 0x35b   :  { %590 = shalt.err (!%p587_p9)
}
 0x35c   :  { %447 = dma.vmem_to_hbm [thread:$0]  %s442_s6, 512, %s726_s2, [#allocation7], %s598_s19, %s598_s19, %s599_s20  }
 0x35d   :  { %595 = dma.done.wait [#allocation7], 512  }
 0x35e   :  { %596 = vsyncadd [#allocation7], 4294966784 }
 0x35f   :  { %451 = vsyncpa [#allocation6], 1 }
 0x360   :  { %452 = vsyncpa [#allocation9], 1 }
 0x361   :  { %453 = vsyncpa [#allocation7], 1 }

</bundles_post_ra>
